<compile_context>
chip_gen: v5e
topology: v5e:2x2
jax: 0.10.0
libtpu: 0.0.40
codegen_flags: <defaults>
</compile_context>

<pallas_src>
import jax
import jax.numpy as jnp
from jax.experimental import pallas as pl
from jax.experimental.pallas import tpu as pltpu


def _round_up(x: int, m: int) -> int:
    return pl.cdiv(x, m) * m


def _gemm_bias_kernel(x_ref, w_ref, b_ref, o_ref):
    # x_ref: (bm, tk) bf16   flattened (normalization-folded) image tile
    # w_ref: (tk, bn) bf16   folded classifier weight tile (streamed over k)
    # b_ref: (1,  bn) f32    folded classifier bias tile
    # o_ref: (bm, bn) f32    logits tile, resident across the k (reduction) axis
    k = pl.program_id(2)

    @pl.when(k == 0)
    def _():
        o_ref[...] = jnp.broadcast_to(b_ref[...], o_ref.shape)

    o_ref[...] += jnp.dot(x_ref[...], w_ref[...],
                          preferred_element_type=jnp.float32)


class GeneralModelTPU:
    """Pallas/TPU mirror of GeneralTorchModel with a linear stand-in model.

    logits = flatten((image - im_mean) / im_std) @ W + b
    The per-channel normalization is folded into (W, b) once at wrap time and
    the folded, padded, bf16 weight is cached; forward() is a single streamed
    GEMM + bias Pallas kernel.
    """

    def __init__(self, w, b, input_shape, n_class=None,
                 im_mean=None, im_std=None):
        C, H, W_ = input_shape
        self._C, self._H, self._W = C, H, W_
        D = C * H * W_
        self._D = D
        self._n_class = int(w.shape[1]) if n_class is None else int(n_class)
        self.num_queries = 0

        # --- correctness guards (host-side; im_mean/im_std are Python seqs) --
        if (im_mean is None) != (im_std is None):
            raise ValueError("im_mean and im_std must both be given or both None")
        if isinstance(im_std, (list, tuple)) and any(float(s) == 0.0 for s in im_std):
            raise ValueError("im_std contains a zero entry (division by zero)")

        # --- fold (x - mean) / std into W and b (one-time cost) --------------
        w_f32 = jnp.asarray(w, jnp.float32)
        b_f32 = jnp.asarray(b, jnp.float32)
        if im_mean is not None:
            mean_c = jnp.asarray(im_mean, jnp.float32)
            inv_std_c = 1.0 / jnp.asarray(im_std, jnp.float32)
            mean_vec = jnp.broadcast_to(mean_c[:, None, None], (C, H, W_)).reshape(D)
            inv_std_vec = jnp.broadcast_to(inv_std_c[:, None, None], (C, H, W_)).reshape(D)
            w_fold = w_f32 * inv_std_vec[:, None]
            b_fold = b_f32 - (mean_vec * inv_std_vec) @ w_f32
        else:
            w_fold = w_f32
            b_fold = b_f32

        # --- column / reduction tile selection (B-independent) ---------------
        n_pad = _round_up(self._n_class, 128)
        if n_pad >= 256:
            # prefer >=2 column tiles so the "parallel" j axis can shard
            # across the two v7x TensorCores
            bn = max(t for t in (512, 256, 128) if n_pad % t == 0 and n_pad // t >= 2)
        else:
            bn = n_pad
        # Target ~2 MiB bf16 W blocks per grid step (HBM-bound stream).
        target_w_bytes = 2 * 1024 * 1024
        tk = max(512, (target_w_bytes // (bn * 2)) // 128 * 128)
        tk = min(tk, _round_up(D, 128))
        # VMEM footprint guard (worst case bm=128, double-buffered in/out).
        def _footprint(tk_):
            return 2 * (128 * tk_ + tk_ * bn) * 2 + 2 * 128 * bn * 4 + bn * 4
        while tk > 512 and _footprint(tk) > 24 * 1024 * 1024:
            tk -= 128
        d_pad = _round_up(D, tk)

        self._bn, self._tk, self._n_pad, self._d_pad = bn, tk, n_pad, d_pad

        # --- cached padded bf16 weight / f32 bias (done once, reused) --------
        self._w_p = jnp.zeros((d_pad, n_pad), jnp.bfloat16).at[:D, :self._n_class].set(
            w_fold.astype(jnp.bfloat16))
        self._b_p = jnp.zeros((1, n_pad), jnp.float32).at[0, :self._n_class].set(b_fold)

        self._fwd_cache = {}

    # --------------------------------------------------------------------- #
    def _row_tile(self, B: int):
        if B >= 256:
            bm = 128
        elif B >= 32:
            # >=2 row tiles for megacore, multiple of 16 for bf16 packing
            bm = min(128, _round_up(pl.cdiv(B, 2), 16))
        else:
            bm = _round_up(B, 16)
        return bm, _round_up(B, bm)

    def _build_fwd(self, B: int):
        bm, b_pad = self._row_tile(B)
        D, d_pad = self._D, self._d_pad
        n_class, n_pad = self._n_class, self._n_pad
        bn, tk = self._bn, self._tk
        grid = (b_pad // bm, n_pad // bn, d_pad // tk)

        cost = pl.CostEstimate(
            flops=2 * b_pad * d_pad * n_pad,
            transcendentals=0,
            bytes_accessed=(b_pad * d_pad * 2 + d_pad * n_pad * 2
                            + n_pad * 4 + b_pad * n_pad * 4))

        gemm = pl.pallas_call(
            _gemm_bias_kernel,
            out_shape=jax.ShapeDtypeStruct((b_pad, n_pad), jnp.float32),
            grid_spec=pltpu.PrefetchScalarGridSpec(
                num_scalar_prefetch=0,
                grid=grid,
                in_specs=[
                    pl.BlockSpec((bm, tk), lambda i, j, k: (i, k)),
                    pl.BlockSpec((tk, bn), lambda i, j, k: (k, j)),
                    pl.BlockSpec((1, bn), lambda i, j, k: (0, j)),
                ],
                out_specs=pl.BlockSpec((bm, bn), lambda i, j, k: (i, j)),
            ),
            compiler_params=pltpu.CompilerParams(
                dimension_semantics=("parallel", "parallel", "arbitrary"),
                vmem_limit_bytes=32 * 1024 * 1024,
            ),
            cost_estimate=cost,
        )

        def fwd(image, w_p, b_p):
            x2d = image.astype(jnp.float32).reshape(B, D).astype(jnp.bfloat16)
            x_p = jnp.zeros((b_pad, d_pad), jnp.bfloat16).at[:B, :D].set(x2d)
            out = gemm(x_p, w_p, b_p)
            return out[:B, :n_class]

        return jax.jit(fwd)

    # --------------------------------------------------------------------- #
    def forward(self, image):
        image = jnp.asarray(image, jnp.float32)
        if image.ndim != 4:                      # torch: image.unsqueeze(0)
            image = image[None]
        B = image.shape[0]
        if B not in self._fwd_cache:
            self._fwd_cache[B] = self._build_fwd(B)
        return self._fwd_cache[B](image, self._w_p, self._b_p)

    def predict_prob(self, image):
        image = jnp.asarray(image, jnp.float32)
        if image.ndim != 4:
            image = image[None]
        logits = self.forward(image)
        self.num_queries += image.shape[0]
        return logits

    def predict_label(self, image):
        logits = self.predict_prob(image)
        return jnp.argmax(logits, axis=1)


if __name__ == "__main__":
    # Small shapes consistent with the module's image-classifier usage.
    B, C, H, W = 2, 4, 16, 16
    n_class = 10
    D = C * H * W

    key = jax.random.PRNGKey(0)
    k_img, k_w, k_b = jax.random.split(key, 3)

    image = jax.random.uniform(k_img, (B, C, H, W), jnp.float32)      # "pixels"
    w = jax.random.normal(k_w, (D, n_class), jnp.float32) * 0.02      # synthetic classifier
    b = jax.random.normal(k_b, (n_class,), jnp.float32) * 0.1

    im_mean = [0.5, 0.5, 0.5, 0.5]   # per-channel (C = 4)
    im_std = [0.25, 0.25, 0.25, 0.25]

    model = GeneralModelTPU(w, b, (C, H, W), n_class=n_class,
                            im_mean=im_mean, im_std=im_std)

    logits = model.forward(image)
    logits = jax.block_until_ready(logits)

    # Pure-JAX f32 reference for the same forward (normalize, then matmul).
    mean_r = jnp.asarray(im_mean, jnp.float32)[None, :, None, None]
    std_r = jnp.asarray(im_std, jnp.float32)[None, :, None, None]
    xn_r = (image - mean_r) / std_r
    ref = xn_r.reshape(B, D) @ w + b[None, :]

    assert logits.shape == (B, n_class)
    # bf16 operands with f32 accumulation -> bf16-level tolerance vs f32 ref.
    assert jnp.allclose(logits, ref, atol=3e-2, rtol=3e-2)
    assert jnp.array_equal(jnp.argmax(logits, axis=1), jnp.argmax(ref, axis=1))

    # predict_label path (exercises 3-D input unsqueeze + query counting).
    lbl = jax.block_until_ready(model.predict_label(image[0]))
    assert lbl.shape == (1,)
    assert int(lbl[0]) == int(jnp.argmax(ref[0]))
    assert model.num_queries == 1

    print("KERNEL_OK")
</pallas_src>

<mosaic_0001>
module attributes {stable_mosaic.version = 11 : i64} {
  func.func @_gemm_bias_kernel(%arg0: i32, %arg1: i32, %arg2: i32, %arg3: memref<16x1024xbf16, #tpu.memory_space<vmem>>, %arg4: memref<1024x128xbf16, #tpu.memory_space<vmem>>, %arg5: memref<1x128xf32, #tpu.memory_space<vmem>>, %arg6: memref<16x128xf32, #tpu.memory_space<vmem>>) attributes {dimension_semantics = [#tpu.dimension_semantics<parallel>, #tpu.dimension_semantics<parallel>, #tpu.dimension_semantics<arbitrary>], iteration_bounds = array<i64: 1, 1, 1>, scalar_prefetch = 0 : i64, scratch_operands = 0 : i64, tpu.core_type = #tpu.core_type<tc>, window_params = [{transform_indices = @transform_0, window_bounds = array<i64: 16, 1024>}, {transform_indices = @transform_1, window_bounds = array<i64: 1024, 128>}, {transform_indices = @transform_2, window_bounds = array<i64: 1, 128>}, {transform_indices = @transform_3, window_bounds = array<i64: 16, 128>}]} {
    %c0_i32 = arith.constant 0 : i32
    %0 = arith.cmpi eq, %arg2, %c0_i32 : i32
    %1 = arith.extui %0 : i1 to i32
    %c0_i32_0 = arith.constant 0 : i32
    %2 = arith.cmpi ne, %1, %c0_i32_0 : i32
    scf.if %2 {
      %c0_8 = arith.constant 0 : index
      %c0_9 = arith.constant 0 : index
      %9 = vector.load %arg5[%c0_8, %c0_9] : memref<1x128xf32, #tpu.memory_space<vmem>>, vector<1x128xf32>
      %10 = vector.shape_cast %9 : vector<1x128xf32> to vector<1x128xf32>
      %11 = vector.broadcast %10 : vector<1x128xf32> to vector<16x128xf32>
      %c0_10 = arith.constant 0 : index
      %c0_11 = arith.constant 0 : index
      %12 = vector.load %arg6[%c0_10, %c0_11] : memref<16x128xf32, #tpu.memory_space<vmem>>, vector<16x128xf32>
      tpu.vector_store %arg6[%c0_10, %c0_11], %11 {strides = array<i32>} : memref<16x128xf32, #tpu.memory_space<vmem>>, vector<16x128xf32>,
    } else {
    }
    %c0 = arith.constant 0 : index
    %c0_1 = arith.constant 0 : index
    %3 = vector.load %arg6[%c0, %c0_1] : memref<16x128xf32, #tpu.memory_space<vmem>>, vector<16x128xf32>
    %c0_2 = arith.constant 0 : index
    %c0_3 = arith.constant 0 : index
    %4 = vector.load %arg3[%c0_2, %c0_3] : memref<16x1024xbf16, #tpu.memory_space<vmem>>, vector<16x1024xbf16>
    %c0_4 = arith.constant 0 : index
    %c0_5 = arith.constant 0 : index
    %5 = vector.load %arg4[%c0_4, %c0_5] : memref<1024x128xbf16, #tpu.memory_space<vmem>>, vector<1024x128xbf16>
    %cst = arith.constant dense<0.000000e+00> : vector<16x128xf32>
    %6 = tpu.matmul %4, %5, %cst {dimension_numbers = #tpu.dot_dimension_numbers<[1], [0], [0], [1], [0, 0, 1, 1], [], []>} : vector<16x1024xbf16>, vector<1024x128xbf16>, vector<16x128xf32> -> vector<16x128xf32>
    %7 = arith.addf %3, %6 : vector<16x128xf32>
    %c0_6 = arith.constant 0 : index
    %c0_7 = arith.constant 0 : index
    %8 = vector.load %arg6[%c0_6, %c0_7] : memref<16x128xf32, #tpu.memory_space<vmem>>, vector<16x128xf32>
    tpu.vector_store %arg6[%c0_6, %c0_7], %7 {strides = array<i32>} : memref<16x128xf32, #tpu.memory_space<vmem>>, vector<16x128xf32>,
    return
  }
  func.func @transform_0(%arg0: i32, %arg1: i32, %arg2: i32) -> (i32, i32) {
    %c0_i32 = arith.constant 0 : i32
    return %arg0, %arg2 : i32, i32
  }
  func.func @transform_1(%arg0: i32, %arg1: i32, %arg2: i32) -> (i32, i32) {
    %c0_i32 = arith.constant 0 : i32
    return %arg2, %arg1 : i32, i32
  }
  func.func @transform_2(%arg0: i32, %arg1: i32, %arg2: i32) -> (i32, i32) {
    %c0_i32 = arith.constant 0 : i32
    %c0_i32_0 = arith.constant 0 : i32
    return %c0_i32, %arg1 : i32, i32
  }
  func.func @transform_3(%arg0: i32, %arg1: i32, %arg2: i32) -> (i32, i32) {
    %c0_i32 = arith.constant 0 : i32
    return %arg0, %arg1 : i32, i32
  }
}

</mosaic_0001>

<bundles_post_ra>
// kernel: fwd.1
= control target key start
LH: loop header
LB: loop body
LE: loop exit
PB: predicated region body
PF: predicated region fallthrough
CT: control target
= control target key end

     0   :  { %8 = vsyncpa [#allocation3], 0  ;;  %s1113_s15 = smov [#allocation2]   ;;  %s1114_s17 = smov 64   ;;  %s1196_s0 = inlined_call_operand.vmem [shape: bf16[16,1024], index: 0, kind: input, shape index: {}]   ;;  %s1197_s1 = inlined_call_operand.hbm [shape: bf16[1024,128], index: 1, kind: input, shape index: {}]   ;;  %s1198_s2 = inlined_call_operand.vmem [shape: f32[1,128], index: 2, kind: input, shape index: {}]   ;;  %s1199_s3 = inlined_call_operand.vmem [shape: f32[16,128], index: 3, kind: output, shape index: {}]  }
   0x1   :  { %s15_s14 = sshll.u32 %s1197_s1, 4  ;;  %s17_s16 = sshll.u32 %s1113_s15, 4  ;;  %s16_s14 = int_to_ptr.hbm [resolvable:$true] %s15_s14  ;;  %s18_s16 = int_to_ptr.vmem [resolvable:$true] %s17_s16 }
   0x2   :  { %s1115_s18 = smov 4  }
   0x3   :  { %23 = dma.hbm_to_vmem [thread:$0]  %s16_s14, 8192, %s18_s16, [#allocation3], %s1114_s17, %s1114_s17, %s1115_s18  }
   0x4   :  { %1111 = dma.done.wait [#allocation3], 8192  }
   0x5   :  { %1112 = vsyncadd [#allocation3], 4294959104  ;;  %v1026_v0 = vld [vmem:[#allocation2 + $0x38] sm:$0xff]  ;;  %v1025_v4 = vld [vmem:[#allocation2 + $0x30] sm:$0xff] }
   0x6   :  { %v1034_v1 = vld [vmem:[#allocation2 + $0x78] sm:$0xff]  ;;  %602 = vmatpush.bf16.msra.mxu0 %v1026_v0  ;;  %v1033_v5 = vld [vmem:[#allocation2 + $0x70] sm:$0xff]  ;;  %v1024_v8 = vld [vmem:[#allocation2 + $0x28] sm:$0xff] }
   0x7   :  { %v1042_v2 = vld [vmem:[#allocation2 + $0xb8] sm:$0xff]  ;;  %616 = vmatpush.bf16.msra.mxu1 %v1034_v1  ;;  %v1041_v6 = vld [vmem:[#allocation2 + $0xb0] sm:$0xff]  ;;  %v1032_v9 = vld [vmem:[#allocation2 + $0x68] sm:$0xff] }
   0x8   :  { %v1050_v3 = vld [vmem:[#allocation2 + $0xf8] sm:$0xff]  ;;  %630 = vmatpush.bf16.msra.mxu2 %v1042_v2  ;;  %v1049_v7 = vld [vmem:[#allocation2 + $0xf0] sm:$0xff]  ;;  %v1040_v10 = vld [vmem:[#allocation2 + $0xa8] sm:$0xff] }
   0x9   :  { %644 = vmatpush.bf16.msra.mxu3 %v1050_v3  ;;  %v1048_v11 = vld [vmem:[#allocation2 + $0xe8] sm:$0xff]  ;;  %v1023_v12 = vld [vmem:[#allocation2 + $0x20] sm:$0xff]  ;;  %v1022_v16 = vld [vmem:[#allocation2 + $0x18] sm:$0xff] }
   0xa   :  { %603 = vmatpush.bf16.msra.mxu0 %v1025_v4  ;;  %v1031_v13 = vld [vmem:[#allocation2 + $0x60] sm:$0xff]  ;;  %v1030_v17 = vld [vmem:[#allocation2 + $0x58] sm:$0xff]  ;;  %v1021_v20 = vld [vmem:[#allocation2 + $0x10] sm:$0xff] }
   0xb   :  { %617 = vmatpush.bf16.msra.mxu1 %v1033_v5  ;;  %v1039_v14 = vld [vmem:[#allocation2 + $0xa0] sm:$0xff]  ;;  %v1038_v18 = vld [vmem:[#allocation2 + $0x98] sm:$0xff]  ;;  %v1029_v21 = vld [vmem:[#allocation2 + $0x50] sm:$0xff] }
   0xc   :  { %631 = vmatpush.bf16.msra.mxu2 %v1041_v6  ;;  %v1047_v15 = vld [vmem:[#allocation2 + $0xe0] sm:$0xff]  ;;  %v1046_v19 = vld [vmem:[#allocation2 + $0xd8] sm:$0xff]  ;;  %v1037_v22 = vld [vmem:[#allocation2 + $0x90] sm:$0xff] }
   0xd   :  { %645 = vmatpush.bf16.msra.mxu3 %v1049_v7  ;;  %v1045_v23 = vld [vmem:[#allocation2 + $0xd0] sm:$0xff]  ;;  %v1020_v24 = vld [vmem:[#allocation2 + $0x8] sm:$0xff]  ;;  %v1019_v28 = vld [vmem:[#allocation2] sm:$0xff] }
   0xe   :  { %604 = vmatpush.bf16.msra.mxu0 %v1024_v8  ;;  %v1028_v25 = vld [vmem:[#allocation2 + $0x48] sm:$0xff]  ;;  %v1027_v29 = vld [vmem:[#allocation2 + $0x40] sm:$0xff]  ;;  %v1058_v32 = vld [vmem:[#allocation2 + $0x138] sm:$0xff] }
   0xf   :  { %618 = vmatpush.bf16.msra.mxu1 %v1032_v9  ;;  %v1036_v26 = vld [vmem:[#allocation2 + $0x88] sm:$0xff]  ;;  %v1035_v30 = vld [vmem:[#allocation2 + $0x80] sm:$0xff]  ;;  %v1066_v33 = vld [vmem:[#allocation2 + $0x178] sm:$0xff] }
  0x10   :  { %632 = vmatpush.bf16.msra.mxu2 %v1040_v10  ;;  %v1044_v27 = vld [vmem:[#allocation2 + $0xc8] sm:$0xff]  ;;  %v1043_v31 = vld [vmem:[#allocation2 + $0xc0] sm:$0xff]  ;;  %v1074_v42 = vld [vmem:[#allocation2 + $0x1b8] sm:$0xff] }
  0x11   :  { %646 = vmatpush.bf16.msra.mxu3 %v1048_v11  ;;  %v733_v34 = vld [vmem:[%s1196_s0 + $0x8] sm:$0xf]  ;;  %v1012_v36 = vld [vmem:[%s1196_s0 + $0xc] sm:$0xf]  ;;  %v725_v38 = vld [vmem:[%s1196_s0] sm:$0xf] }
  0x12   :  { %605 = vmatpush.bf16.msra.mxu0 %v1023_v12  ;;  %v1016_v35 = vld [vmem:[%s1196_s0 + $0x24] sm:$0xf0]  ;;  %v735_v37 = vld [vmem:[%s1196_s0 + $0x28] sm:$0xf0]  ;;  %v1015_v39 = vld [vmem:[%s1196_s0 + $0x1c] sm:$0xf0] }
  0x13   :  { %619 = vmatpush.bf16.msra.mxu1 %v1031_v13  ;;  %v1011_v40 = vld [vmem:[%s1196_s0 + $0x4] sm:$0xf]  ;;  %v1082_v43 = vld [vmem:[#allocation2 + $0x1f8] sm:$0xff]  ;;  %v734_v44 = vor.u32 %v1016_v35, %v733_v34  ;;  %v738_v45 = vor.u32 %v1012_v36, %v735_v37  ;;  %v726_v46 = vor.u32 %v1015_v39, %v725_v38  ;;  %v1057_v48 = vld [vmem:[#allocation2 + $0x130] sm:$0xff] }
  0x14   :  { %633 = vmatpush.bf16.msra.mxu2 %v1039_v14  ;;  %v727_v41 = vld [vmem:[%s1196_s0 + $0x20] sm:$0xf0]  ;;  %v1065_v49 = vld [vmem:[#allocation2 + $0x170] sm:$0xff]  ;;  %v1056_v52 = vld [vmem:[#allocation2 + $0x128] sm:$0xff] }
  0x15   :  { %647 = vmatpush.bf16.msra.mxu3 %v1047_v15  ;;  %v730_v47 = vor.u32 %v1011_v40, %v727_v41  ;;  %v1073_v50 = vld [vmem:[#allocation2 + $0x1b0] sm:$0xff]  ;;  %v1064_v53 = vld [vmem:[#allocation2 + $0x168] sm:$0xff]  ;;  %v1055_v56 = vld [vmem:[#allocation2 + $0x120] sm:$0xff] }
  0x16   :  { %606 = vmatpush.bf16.msra.mxu0 %v1022_v16  ;;  %v1081_v51 = vld [vmem:[#allocation2 + $0x1f0] sm:$0xff]  ;;  %v1072_v54 = vld [vmem:[#allocation2 + $0x1a8] sm:$0xff]  ;;  %v1063_v57 = vld [vmem:[#allocation2 + $0x160] sm:$0xff] }
  0x17   :  { %620 = vmatpush.bf16.msra.mxu1 %v1030_v17  ;;  %v1080_v55 = vld [vmem:[#allocation2 + $0x1e8] sm:$0xff]  ;;  %v1071_v58 = vld [vmem:[#allocation2 + $0x1a0] sm:$0xff]  ;;  %v1054_v60 = vld [vmem:[#allocation2 + $0x118] sm:$0xff] }
  0x18   :  { %634 = vmatpush.bf16.msra.mxu2 %v1038_v18  ;;  %v1079_v59 = vld [vmem:[#allocation2 + $0x1e0] sm:$0xff]  ;;  %v1062_v61 = vld [vmem:[#allocation2 + $0x158] sm:$0xff]  ;;  %v1053_v0 = vld [vmem:[#allocation2 + $0x110] sm:$0xff] }
  0x19   :  { %648 = vmatpush.bf16.msra.mxu3 %v1046_v19  ;;  %v1070_v62 = vld [vmem:[#allocation2 + $0x198] sm:$0xff]  ;;  %v1061_v1 = vld [vmem:[#allocation2 + $0x150] sm:$0xff]  ;;  %v1052_v4 = vld [vmem:[#allocation2 + $0x108] sm:$0xff] }
  0x1a   :  { %607 = vmatpush.bf16.msra.mxu0 %v1021_v20  ;;  %v1078_v63 = vld [vmem:[#allocation2 + $0x1d8] sm:$0xff]  ;;  %v1069_v2 = vld [vmem:[#allocation2 + $0x190] sm:$0xff]  ;;  %v1060_v5 = vld [vmem:[#allocation2 + $0x148] sm:$0xff] }
  0x1b   :  { %621 = vmatpush.bf16.msra.mxu1 %v1029_v21  ;;  %v1077_v3 = vld [vmem:[#allocation2 + $0x1d0] sm:$0xff]  ;;  %v1068_v6 = vld [vmem:[#allocation2 + $0x188] sm:$0xff]  ;;  %v1051_v8 = vld [vmem:[#allocation2 + $0x100] sm:$0xff] }
  0x1c   :  { %635 = vmatpush.bf16.msra.mxu2 %v1037_v22  ;;  %v1076_v7 = vld [vmem:[#allocation2 + $0x1c8] sm:$0xff]  ;;  %v1059_v9 = vld [vmem:[#allocation2 + $0x140] sm:$0xff]  ;;  %v741_v12 = vld [vmem:[%s1196_s0 + $0x10] sm:$0xf] }
  0x1d   :  { %649 = vmatpush.bf16.msra.mxu3 %v1045_v23  ;;  %v1067_v10 = vld [vmem:[#allocation2 + $0x180] sm:$0xff]  ;;  %v1017_v13 = vld [vmem:[%s1196_s0 + $0x2c] sm:$0xf0]  ;;  %v1013_v14 = vld [vmem:[%s1196_s0 + $0x14] sm:$0xf] }
  0x1e   :  { %608 = vmatpush.bf16.msra.mxu0 %v1020_v24  ;;  %v1075_v11 = vld [vmem:[#allocation2 + $0x1c0] sm:$0xff]  ;;  %v743_v15 = vld [vmem:[%s1196_s0 + $0x30] sm:$0xf0]  ;;  %v749_v16 = vld [vmem:[%s1196_s0 + $0x18] sm:$0xf]  ;;  %v742_v20 = vor.u32 %v1017_v13, %v741_v12 }
  0x1f   :  { %622 = vmatpush.bf16.msra.mxu1 %v1028_v25  ;;  %v1018_v17 = vld [vmem:[%s1196_s0 + $0x34] sm:$0xf0]  ;;  %v1014_v18 = vld [vmem:[%s1196_s0 + $0x1c] sm:$0xf]  ;;  %v746_v21 = vor.u32 %v1013_v14, %v743_v15 }
  0x20   :  { %636 = vmatpush.bf16.msra.mxu2 %v1036_v26  ;;  %v751_v19 = vld [vmem:[%s1196_s0 + $0x38] sm:$0xf0]  ;;  %v750_v22 = vor.u32 %v1018_v17, %v749_v16 }
  0x21   :  { %650 = vmatpush.bf16.msra.mxu3 %v1044_v27  ;;  %v754_v23 = vor.u32 %v1014_v18, %v751_v19 }
  0x22   :  { %609 = vmatpush.bf16.msra.mxu0 %v1019_v28 }
  0x23   :  { %623 = vmatpush.bf16.msra.mxu1 %v1027_v29 }
  0x24   :  { %637 = vmatpush.bf16.msra.mxu2 %v1035_v30 }
  0x25   :  { %651 = vmatpush.bf16.msra.mxu3 %v1043_v31  ;;  %610 = vmatmul.bf16.vlgmr.msra.gmra.mxu0 %v726_v46 }
  0x26   :  { %658 = vmatpush.bf16.msrb.mxu0 %v1058_v32  ;;  %624 = vmatmul.bf16.vlgmr.msra.gmra.mxu1 %v730_v47 }
  0x27   :  { %672 = vmatpush.bf16.msrb.mxu1 %v1066_v33  ;;  %638 = vmatmul.bf16.vlgmr.msra.gmra.mxu2 %v734_v44 }
  0x28   :  { %686 = vmatpush.bf16.msrb.mxu2 %v1074_v42  ;;  %652 = vmatmul.bf16.vlgmr.msra.gmra.mxu3 %v738_v45  ;;  %v1086_v45 = vld [vmem:[%s1198_s2] ss:$0 sm:$0xff] }
  0x29   :  { %700 = vmatpush.bf16.msrb.mxu3 %v1082_v43 }
  0x2a   :  { %659 = vmatpush.bf16.msrb.mxu0 %v1057_v48 }
  0x2b   :  { %673 = vmatpush.bf16.msrb.mxu1 %v1065_v49 }
  0x2c   :  { %687 = vmatpush.bf16.msrb.mxu2 %v1073_v50 }
  0x2d   :  { %701 = vmatpush.bf16.msrb.mxu3 %v1081_v51 }
  0x2e   :  { %660 = vmatpush.bf16.msrb.mxu0 %v1056_v52 }
  0x2f   :  { %674 = vmatpush.bf16.msrb.mxu1 %v1064_v53 }
  0x30   :  { %688 = vmatpush.bf16.msrb.mxu2 %v1072_v54 }
  0x31   :  { %702 = vmatpush.bf16.msrb.mxu3 %v1080_v55 }
  0x32   :  { %661 = vmatpush.bf16.msrb.mxu0 %v1055_v56 }
  0x33   :  { %675 = vmatpush.bf16.msrb.mxu1 %v1063_v57 }
  0x34   :  { %689 = vmatpush.bf16.msrb.mxu2 %v1071_v58 }
  0x35   :  { %703 = vmatpush.bf16.msrb.mxu3 %v1079_v59 }
  0x36   :  { %662 = vmatpush.bf16.msrb.mxu0 %v1054_v60 }
  0x37   :  { %676 = vmatpush.bf16.msrb.mxu1 %v1062_v61 }
  0x38   :  { %690 = vmatpush.bf16.msrb.mxu2 %v1070_v62 }
  0x39   :  { %704 = vmatpush.bf16.msrb.mxu3 %v1078_v63 }
  0x3a   :  { %663 = vmatpush.bf16.msrb.mxu0 %v1053_v0 }
  0x3b   :  { %677 = vmatpush.bf16.msrb.mxu1 %v1061_v1 }
  0x3c   :  { %691 = vmatpush.bf16.msrb.mxu2 %v1069_v2 }
  0x3d   :  { %705 = vmatpush.bf16.msrb.mxu3 %v1077_v3 }
  0x3e   :  { %664 = vmatpush.bf16.msrb.mxu0 %v1052_v4 }
  0x3f   :  { %678 = vmatpush.bf16.msrb.mxu1 %v1060_v5 }
  0x40   :  { %692 = vmatpush.bf16.msrb.mxu2 %v1068_v6 }
  0x41   :  { %706 = vmatpush.bf16.msrb.mxu3 %v1076_v7 }
  0x42   :  { %665 = vmatpush.bf16.msrb.mxu0 %v1051_v8 }
  0x43   :  { %679 = vmatpush.bf16.msrb.mxu1 %v1059_v9 }
  0x44   :  { %693 = vmatpush.bf16.msrb.mxu2 %v1067_v10 }
  0x45   :  { %707 = vmatpush.bf16.msrb.mxu3 %v1075_v11  ;;  %666 = vmatmul.bf16.vlgmr.msrb.gmra.mxu0 %v742_v20 }
  0x46   :  { %680 = vmatmul.bf16.vlgmr.msrb.gmra.mxu1 %v746_v21 }
  0x47   :  { %694 = vmatmul.bf16.vlgmr.msrb.gmra.mxu2 %v750_v22 }
  0x48   :  { %708 = vmatmul.bf16.vlgmr.msrb.gmra.mxu3 %v754_v23 }
  0xa2   :  { %v611_v24 = vpop.f32.mrf.mxu0 }
  0xa3   :  { %v625_v25 = vpop.f32.mrf.mxu1 }
  0xa4   :  { %v626_v28 = vadd.f32 %v625_v25, %v611_v24 }
  0xaa   :  { %v639_v26 = vpop.f32.mrf.mxu2  ;;  %v613_v29 = vpop.f32.mrf.mxu0 }
  0xab   :  { %v653_v27 = vpop.f32.mrf.mxu3  ;;  %v627_v30 = vpop.f32.mrf.mxu1  ;;  %v640_v31 = vadd.f32 %v639_v26, %v626_v28 }
  0xac   :  { %v628_v35 = vadd.f32 %v627_v30, %v613_v29 }
  0xad   :  { %v654_v34 = vadd.f32 %v653_v27, %v640_v31 }
  0xb2   :  { %v641_v32 = vpop.f32.mrf.mxu2 }
  0xb3   :  { %v655_v33 = vpop.f32.mrf.mxu3  ;;  %v642_v39 = vadd.f32 %v641_v32, %v628_v35 }
  0xb5   :  { %v656_v43 = vadd.f32 %v655_v33, %v642_v39 }
  0xc2   :  { %v667_v36 = vpop.f32.mrf.mxu0 }
  0xc3   :  { %v668_v37 = vadd.f32 %v667_v36, %v654_v34  ;;  %v681_v38 = vpop.f32.mrf.mxu1 }
  0xc5   :  { %v682_v40 = vadd.f32 %v681_v38, %v668_v37 }
  0xca   :  { %v695_v41 = vpop.f32.mrf.mxu2  ;;  %v669_v46 = vpop.f32.mrf.mxu0 }
  0xcb   :  { %v709_v42 = vpop.f32.mrf.mxu3  ;;  %v696_v44 = vadd.f32 %v695_v41, %v682_v40  ;;  %v670_v48 = vadd.f32 %v669_v46, %v656_v43  ;;  %v683_v50 = vpop.f32.mrf.mxu1 }
  0xcd   :  { %v710_v47 = vadd.f32 %v709_v42, %v696_v44  ;;  %v684_v51 = vadd.f32 %v683_v50, %v670_v48 }
  0xcf   :  { %v714_v49 = vadd.f32 %v1086_v45, %v710_v47 }
  0xd1   :  { %716 = vst [vmem:[%s1199_s3] sm:$0xff] %v714_v49 }
  0xd2   :  { %v697_v52 = vpop.f32.mrf.mxu2 }
  0xd3   :  { %v698_v53 = vadd.f32 %v697_v52, %v684_v51  ;;  %v711_v54 = vpop.f32.mrf.mxu3 }
  0xd5   :  { %v712_v55 = vadd.f32 %v711_v54, %v698_v53 }
  0xd7   :  { %v715_v56 = vadd.f32 %v1086_v45, %v712_v55 }
  0xd9   :  { %717 = vst [vmem:[%s1199_s3 + $0x8] sm:$0xff] %v715_v56 }
  0xda   :  { %722 = vsyncpa [#allocation3], 1 }

</bundles_post_ra>
